<compile_context>
chip_gen: v7x
topology: tpu7x:2x2x1
jax: 0.10.0
libtpu: 0.0.40
codegen_flags: <defaults>
</compile_context>

<pallas_src>
import functools

import jax
import jax.numpy as jnp
from jax.experimental import pallas as pl
from jax.experimental.pallas import tpu as pltpu


def _round_up(x, m):
    return ((x + m - 1) // m) * m


def _elementwise_dtype():
    """bf16 logit/exp path on v6e/v7x (bf16 VPU+EUP); f32 on v5e and older."""
    try:
        kind = jax.devices()[0].device_kind.lower()
    except Exception:
        return jnp.float32
    return jnp.bfloat16 if ("v6" in kind or "v7" in kind) else jnp.float32


# ----------------------------------------------------------------------------
# Kernel 1: fused linear transform  [W | W@att_dst | W@att_src]^T @ x^T
# (transposed layout: channels on sublanes, nodes on lanes)
# ----------------------------------------------------------------------------
def _linear_t_kernel(w_ref, x_ref, o_ref):
    o_ref[...] = jnp.dot(w_ref[...], x_ref[...],
                         preferred_element_type=jnp.float32)


def _linear_t(w_t, x_t, tile):
    c_pad, f_in = w_t.shape
    _, n_pad = x_t.shape
    return pl.pallas_call(
        _linear_t_kernel,
        out_shape=jax.ShapeDtypeStruct((c_pad, n_pad), jnp.float32),
        grid=(n_pad // tile,),
        in_specs=[pl.BlockSpec((c_pad, f_in), lambda j: (0, 0)),
                  pl.BlockSpec((f_in, tile), lambda j: (0, j))],
        out_specs=pl.BlockSpec((c_pad, tile), lambda j: (0, j)),
        compiler_params=pltpu.CompilerParams(
            dimension_semantics=("parallel",)),
    )(w_t, x_t)


# ----------------------------------------------------------------------------
# Kernel 2: head-batched masked attention, online softmax over source tiles,
#           destination nodes on the lane axis, nonzero tiles only.
# ----------------------------------------------------------------------------
def _gat_attn_kernel(col_ids_ref, nnz_ref,                          # SMEM
                     adj_ref, adst_ref, asrc_ref, xw_ref, bias_ref,  # inputs
                     out_ref,                                        # output
                     m_sc, l_sc, acc_sc,                             # scratch
                     *, heads, f_out, concat, activation, out_dim, c_pad):
    i = pl.program_id(0)
    k = pl.program_id(1)
    nk = pl.num_programs(1)
    cdt = adst_ref.dtype
    neg_big = jnp.array(-1e30, dtype=cdt)
    # Finite floor for the running max: masked logits (-1e30) then underflow to
    # exactly 0 in exp(e - m), so no per-element select is needed on p.
    m_floor = jnp.float32(-1e4)

    @pl.when(k == 0)
    def _init():
        m_sc[...] = jnp.full_like(m_sc, m_floor)
        l_sc[...] = jnp.zeros_like(l_sc)
        acc_sc[...] = jnp.zeros_like(acc_sc)

    # Only the first nnz[i] k-steps carry a real (nonzero) adjacency tile; the
    # padded steps repeat the previous block index (so no DMA) and are skipped.
    @pl.when(k < nnz_ref[i])
    def _update():
        mask = adj_ref[...] > 0                         # [TK, TQ] (int8 source)
        # e[h, s, q] = LeakyReLU(alpha_dst[h, q] + alpha_src[h, s], 0.2)
        e = adst_ref[...] + asrc_ref[...]               # [H,1,TQ] + [H,TK,1]
        e = jnp.maximum(e, e * 0.2)                     # LeakyReLU, no select
        e = jnp.where(mask[None, :, :], e, neg_big)     # only existing edges

        m_prev = m_sc[...]                              # [H, 1, TQ] f32
        m_new = jnp.maximum(
            m_prev, jnp.max(e, axis=1, keepdims=True).astype(jnp.float32))
        alpha = jnp.exp(m_prev - m_new)                 # [H, 1, TQ]
        # masked lanes: e - m_new <= -1e30 + 1e4 -> exp underflows to exactly 0
        p = jnp.exp(e - m_new.astype(cdt))              # [H, TK, TQ]

        # One MXU call per tile: rows 0..F-1 accumulate p @ xW, the appended
        # all-ones row F accumulates the softmax denominator.
        contrib = jnp.einsum('hfs,hsq->hfq', xw_ref[...],
                             p.astype(xw_ref.dtype),
                             preferred_element_type=jnp.float32)  # [H,F+1,TQ]
        l_sc[...] = alpha * l_sc[...] + contrib[:, f_out:f_out + 1, :]
        acc_sc[...] = alpha * acc_sc[...] + contrib[:, :f_out, :]
        m_sc[...] = m_new

    @pl.when(k == nk - 1)
    def _finalize():
        tq = out_ref.shape[-1]
        inv_l = pl.reciprocal(l_sc[...], approx=True)   # [H, 1, TQ]
        norm = acc_sc[...] * inv_l                      # [H, F, TQ]
        if concat:
            val = norm + bias_ref[...]                  # [H, F, TQ]
            if activation == "elu":
                val = jnp.where(val > 0, val, jnp.exp(val) - 1.0)
            if f_out % 8 == 0:
                val = val.reshape(heads * f_out, tq)    # layout no-op
            else:
                val = jnp.concatenate([val[h] for h in range(heads)], axis=0)
        else:
            val = jnp.sum(norm, axis=0) * (1.0 / heads) + bias_ref[...][0]
            if activation == "elu":
                val = jnp.where(val > 0, val, jnp.exp(val) - 1.0)
            elif activation == "log_softmax":
                mx = jnp.max(val, axis=0, keepdims=True)
                z = val - mx
                val = z - jnp.log(jnp.sum(jnp.exp(z), axis=0, keepdims=True))
        if c_pad > out_dim:
            val = jnp.concatenate(
                [val, jnp.zeros((c_pad - out_dim, tq), val.dtype)], axis=0)
        out_ref[...] = val.astype(out_ref.dtype)        # single lane-dense store


def gat_conv(x_t, adj_sd, col_ids, nnz, max_nnz,
             w, att_src, att_dst, bias, *,
             heads, f_out, concat, activation, tile, compute_dtype):
    """One GATConv layer (+ fused bias / activation), transposed layouts.

    x_t    : [f_in, n_pad] bf16  (features on sublanes, nodes on lanes)
    adj_sd : [n_pad, n_pad] int8, adj_sd[s, d] = 1 iff edge s -> d (+ self loops)
    returns: [out_dim, n_pad] f32
    """
    f_in, n_pad = x_t.shape
    hf = heads * f_out
    out_dim = hf if concat else f_out
    c_pad = _round_up(out_dim, 8)
    nq = n_pad // tile

    # --- fold att_src / att_dst into the x @ W matmul (single MXU pass) ------
    w_h = w.reshape(f_in, heads, f_out)
    wa_dst = jnp.einsum('fhd,hd->fh', w_h, att_dst)          # [f_in, H]
    wa_src = jnp.einsum('fhd,hd->fh', w_h, att_src)          # [f_in, H]
    wc = jnp.concatenate([w, wa_dst, wa_src], axis=1)        # [f_in, hf + 2H]
    c_lin = _round_up(wc.shape[1], 128)
    wc_t = jnp.pad(wc, ((0, 0), (0, c_lin - wc.shape[1]))).T  # [c_lin, f_in]

    xc_t = _linear_t(wc_t.astype(jnp.bfloat16), x_t, tile)    # [c_lin, n_pad] f32

    # xW in [H, F, N] layout + an all-ones row per head (softmax denominator)
    xw_t = xc_t[:hf].reshape(heads, f_out, n_pad).astype(jnp.bfloat16)
    xw_aug = jnp.concatenate(
        [xw_t, jnp.ones((heads, 1, n_pad), jnp.bfloat16)], axis=1)  # [H, F+1, N]
    adst = xc_t[hf:hf + heads].astype(compute_dtype)[:, None, :]    # [H, 1, N]
    asrc = xc_t[hf + heads:hf + 2 * heads].astype(compute_dtype)[:, :, None]
    if concat:                                                       # [H, N, 1]
        bias3 = jnp.broadcast_to(bias.reshape(heads, f_out, 1),
                                 (heads, f_out, tile)).astype(jnp.float32)
    else:
        bias3 = jnp.broadcast_to(bias.reshape(1, f_out, 1),
                                 (1, f_out, tile)).astype(jnp.float32)

    kernel = functools.partial(_gat_attn_kernel, heads=heads, f_out=f_out,
                               concat=concat, activation=activation,
                               out_dim=out_dim, c_pad=c_pad)

    def _col(i, k, cols):
        return cols[i * max_nnz + k]

    grid_spec = pltpu.PrefetchScalarGridSpec(
        num_scalar_prefetch=2,
        grid=(nq, max_nnz),
        in_specs=[
            pl.BlockSpec((tile, tile),
                         lambda i, k, cols, nz: (_col(i, k, cols), i)),     # adj
            pl.BlockSpec((heads, 1, tile),
                         lambda i, k, cols, nz: (0, 0, i)),                 # a_dst
            pl.BlockSpec((heads, tile, 1),
                         lambda i, k, cols, nz: (0, _col(i, k, cols), 0)),  # a_src
            pl.BlockSpec((heads, f_out + 1, tile),
                         lambda i, k, cols, nz: (0, 0, _col(i, k, cols))),  # xW+1
            pl.BlockSpec(bias3.shape, lambda i, k, cols, nz: (0, 0, 0)),    # bias
        ],
        out_specs=pl.BlockSpec((c_pad, tile), lambda i, k, cols, nz: (0, i)),
        scratch_shapes=[
            pltpu.VMEM((heads, 1, tile), jnp.float32),      # running max
            pltpu.VMEM((heads, 1, tile), jnp.float32),      # running sum
            pltpu.VMEM((heads, f_out, tile), jnp.float32),  # running weighted acc
        ],
    )

    out_t = pl.pallas_call(
        kernel,
        out_shape=jax.ShapeDtypeStruct((c_pad, n_pad), jnp.float32),
        grid_spec=grid_spec,
        compiler_params=pltpu.CompilerParams(
            dimension_semantics=("parallel", "arbitrary")),
    )(col_ids, nnz, adj_sd, adst, asrc, xw_aug, bias3)
    return out_t[:out_dim]


# ----------------------------------------------------------------------------
# Graph preprocessing: int8 dense adjacency + nonzero-tile lists (O(E))
# ----------------------------------------------------------------------------
def build_graph_tables(edge_index, n_pad, tile):
    src, dst = edge_index[0], edge_index[1]
    nq = n_pad // tile
    diag = jnp.arange(n_pad)
    adj_sd = jnp.zeros((n_pad, n_pad), jnp.int8)
    adj_sd = adj_sd.at[src, dst].set(jnp.int8(1))            # edge s -> d
    adj_sd = adj_sd.at[diag, diag].set(jnp.int8(1))          # self loops

    # O(E) tile-occupancy table (dst-tile, src-tile) -- no N^2 temporaries
    counts = jnp.zeros((nq, nq), jnp.int32)
    counts = counts.at[dst // tile, src // tile].add(1)
    counts = counts.at[jnp.arange(nq), jnp.arange(nq)].add(1)  # self-loop tiles
    nz = counts > 0
    nnz = jnp.sum(nz, axis=1).astype(jnp.int32)               # [nq]
    max_nnz = int(jnp.max(nnz))                               # grid extent
    order = jnp.argsort(jnp.logical_not(nz), axis=1, stable=True).astype(jnp.int32)
    col_ids = order[:, :max_nnz]
    valid = jnp.arange(max_nnz)[None, :] < nnz[:, None]
    last_valid = jnp.take_along_axis(order, jnp.maximum(nnz - 1, 0)[:, None],
                                     axis=1)
    # pad with the last valid id: repeated block index -> Pallas skips the DMA
    col_ids = jnp.where(valid, col_ids, last_valid).astype(jnp.int32)
    return adj_sd, col_ids.reshape(-1), nnz, max_nnz


# ----------------------------------------------------------------------------
# Full 2-layer GAT forward (inference; dropout == identity)
# ----------------------------------------------------------------------------
def gat_forward(x, edge_index, params, *, hidden, in_heads, num_classes,
                tile=128):
    n = x.shape[0]
    n_pad = _round_up(n, tile)
    cdt = _elementwise_dtype()
    adj_sd, col_ids, nnz, max_nnz = build_graph_tables(edge_index, n_pad, tile)

    x_t = jnp.pad(x, ((0, n_pad - n), (0, 0))).T.astype(jnp.bfloat16)  # [f_in, n_pad]
    h_t = gat_conv(x_t, adj_sd, col_ids, nnz, max_nnz,
                   params["w1"], params["asrc1"], params["adst1"], params["b1"],
                   heads=in_heads, f_out=hidden, concat=True, activation="elu",
                   tile=tile, compute_dtype=cdt)                        # [hf, n_pad]
    out_t = gat_conv(h_t.astype(jnp.bfloat16), adj_sd, col_ids, nnz, max_nnz,
                     params["w2"], params["asrc2"], params["adst2"], params["b2"],
                     heads=1, f_out=num_classes, concat=False,
                     activation="log_softmax", tile=tile, compute_dtype=cdt)
    return out_t[:, :n].T                                               # [n, C]


def init_params(key, *, num_features, hidden, in_heads, num_classes):
    ks = jax.random.split(key, 6)

    def glorot(k, shape):
        fan_in, fan_out = shape[0], shape[-1]
        scale = jnp.sqrt(6.0 / (fan_in + fan_out))
        return jax.random.uniform(k, shape, jnp.float32, -scale, scale)

    return {
        # layer 1: GATConv(num_features, hidden, heads=in_heads, concat=True)
        "w1":    glorot(ks[0], (num_features, in_heads * hidden)),
        "asrc1": glorot(ks[1], (in_heads, hidden)),
        "adst1": glorot(ks[2], (in_heads, hidden)),
        "b1":    jnp.zeros((in_heads * hidden,), jnp.float32),
        # layer 2: GATConv(in_heads*hidden, num_classes, heads=1, concat=False)
        "w2":    glorot(ks[3], (in_heads * hidden, 1 * num_classes)),
        "asrc2": glorot(ks[4], (1, num_classes)),
        "adst2": glorot(ks[5], (1, num_classes)),
        "b2":    jnp.zeros((num_classes,), jnp.float32),
    }


if __name__ == "__main__":
    # Small synthetic graph standing in for the Planetoid/PubMed dataset.
    N = 256              # number of nodes
    NUM_FEATURES = 32    # dataset.num_features (synthetic)
    HIDDEN = 8           # hidden_channels
    IN_HEADS = 8
    NUM_CLASSES = 4      # dataset.num_classes (synthetic)
    NUM_EDGES = 512
    TILE = 128

    key = jax.random.PRNGKey(0)
    k_s, k_d, k_p = jax.random.split(key, 3)

    x = jax.random.normal(k_s, (N, NUM_FEATURES), jnp.float32)
    # Destinations confined to the first half of the nodes so row tiles have
    # different nonzero-source-tile counts: exercises the DMA-skip / padded
    # col_ids / gated-compute paths.
    src = jax.random.randint(k_s, (NUM_EDGES,), 0, N, jnp.int32)
    dst = jax.random.randint(k_d, (NUM_EDGES,), 0, N // 2, jnp.int32)
    edge_index = jnp.stack([src, dst])

    params = init_params(k_p, num_features=NUM_FEATURES, hidden=HIDDEN,
                         in_heads=IN_HEADS, num_classes=NUM_CLASSES)

    out = gat_forward(x, edge_index, params,
                      hidden=HIDDEN, in_heads=IN_HEADS,
                      num_classes=NUM_CLASSES, tile=TILE)
    out = jax.block_until_ready(out)

    assert out.shape == (N, NUM_CLASSES)
    assert bool(jnp.all(jnp.isfinite(out)))
    # log_softmax rows should exponentiate-and-sum to ~1
    assert bool(jnp.allclose(jnp.sum(jnp.exp(out), axis=1), 1.0, atol=1e-4))
    print("KERNEL_OK")
</pallas_src>

<mosaic_0001>
module attributes {stable_mosaic.version = 11 : i64} {
  func.func @_linear_t_kernel(%arg0: i32, %arg1: memref<128x32xbf16, #tpu.memory_space<vmem>>, %arg2: memref<32x128xbf16, #tpu.memory_space<vmem>>, %arg3: memref<128x128xf32, #tpu.memory_space<vmem>>) attributes {dimension_semantics = [#tpu.dimension_semantics<parallel>], iteration_bounds = array<i64: 2>, scalar_prefetch = 0 : i64, scratch_operands = 0 : i64, tpu.core_type = #tpu.core_type<tc>, window_params = [{pipeline_mode = #tpu.pipeline_mode<synchronous>, transform_indices = @transform_0, window_bounds = array<i64: 128, 32>}, {transform_indices = @transform_1, window_bounds = array<i64: 32, 128>}, {transform_indices = @transform_2, window_bounds = array<i64: 128, 128>}]} {
    %c0 = arith.constant 0 : index
    %c0_0 = arith.constant 0 : index
    %0 = vector.load %arg1[%c0, %c0_0] : memref<128x32xbf16, #tpu.memory_space<vmem>>, vector<128x32xbf16>
    %c0_1 = arith.constant 0 : index
    %c0_2 = arith.constant 0 : index
    %1 = vector.load %arg2[%c0_1, %c0_2] : memref<32x128xbf16, #tpu.memory_space<vmem>>, vector<32x128xbf16>
    %cst = arith.constant dense<0.000000e+00> : vector<128x128xf32>
    %2 = tpu.matmul %0, %1, %cst {dimension_numbers = #tpu.dot_dimension_numbers<[1], [0], [0], [1], [0, 0, 1, 1], [], []>} : vector<128x32xbf16>, vector<32x128xbf16>, vector<128x128xf32> -> vector<128x128xf32>
    %c0_3 = arith.constant 0 : index
    %c0_4 = arith.constant 0 : index
    %3 = vector.load %arg3[%c0_3, %c0_4] : memref<128x128xf32, #tpu.memory_space<vmem>>, vector<128x128xf32>
    tpu.vector_store %arg3[%c0_3, %c0_4], %2 {strides = array<i32>} : memref<128x128xf32, #tpu.memory_space<vmem>>, vector<128x128xf32>,
    return
  }
  func.func @transform_0(%arg0: i32) -> (i32, i32) {
    %c0_i32 = arith.constant 0 : i32
    %c0_i32_0 = arith.constant 0 : i32
    %c0_i32_1 = arith.constant 0 : i32
    return %c0_i32, %c0_i32_0 : i32, i32
  }
  func.func @transform_1(%arg0: i32) -> (i32, i32) {
    %c0_i32 = arith.constant 0 : i32
    %c0_i32_0 = arith.constant 0 : i32
    return %c0_i32, %arg0 : i32, i32
  }
  func.func @transform_2(%arg0: i32) -> (i32, i32) {
    %c0_i32 = arith.constant 0 : i32
    %c0_i32_0 = arith.constant 0 : i32
    return %c0_i32, %arg0 : i32, i32
  }
}

</mosaic_0001>

<bundles_post_ra>
// kernel: tpu_custom_call.1
= control target key start
LH: loop header
LB: loop body
LE: loop exit
PB: predicated region body
PF: predicated region fallthrough
CT: control target
= control target key end

     0   :  { %7 = vsyncpa [#allocation4], 0  ;;  %s849_s0 = inlined_call_operand.vmem [shape: bf16[128,32], index: 0, kind: input, shape index: {}]   ;;  %s850_s1 = inlined_call_operand.vmem [shape: bf16[32,256], index: 1, kind: input, shape index: {}]   ;;  %s851_s2 = inlined_call_operand.hbm [shape: f32[128,256], index: 2, kind: output, shape index: {}]  }
   0x1   :  { %9 = vsyncpa [#allocation4 + $0x1], 0  ;;  %s686_s9 = smov 0   ;;  %s688_s10 = smov 0  }
   0x2   :  { %s690_s11 = smov 0   ;;  %s692_s12 = smov 0  }
   0x3 LB: > { %s486_s13 = sadd.s32 4294967295, %s665_s12   ;;  %s487_s14 = sadd.s32 4294967294, %s665_s12   ;;  %s665_s12 = sphi %s692_s12, %s857_s12   ;;  %s661_s11 = sphi %s690_s11, %s856_s11   ;;  %s657_s10 = sphi %s688_s10, %s855_s10   ;;  %s653_s9 = sphi %s686_s9, %s854_s9  }
   0x4   : > { %s709_s15 = sadd.s32 1, %s665_s12   ;;  %s43_s16 = sadd.s32 1, %s661_s11 }
   0x5   : > { %s40_s17 = ssub.s32 %s665_s12, %s709_s15  ;;  %p50_p0 = scmp.ne.s32.totalorder %s661_s11, %s657_s10 }
   0x6   : > { %p41_p1 = scmp.eq.s32.totalorder %s40_s17, 0  ;;  %p51_p2 = scmp.eq.s32.totalorder %s665_s12, 0 }
   0x7   : > { %p80_p3 = scmp.eq.s32.totalorder %s486_s13, 1  ;;  %p85_p4 = scmp.ne.s32.totalorder %s657_s10, %s653_s9 }
   0x8   : > { %s722_s18 = scalar_select %p41_p1, %s661_s11, %s43_s16  }
   0x9   : > { %p52_p5 = por %p51_p2, %p50_p0  ;;  %p724_p6 = por %p80_p3, %p50_p0 }
   0xa   : > { %p86_p7 = scmp.eq.s32.totalorder %s487_s14, 1  ;;  %p489_p9 = scmp.ge.s32.totalorder %s665_s12, 2 }
   0xc   : > { %p728_p8 = por %p86_p7, %p85_p4  ;;  %105 = sbr.rel (%p489_p9) target bundleno = 26 (0x1a), region = 20 }
  0x13   : > { %108 = sbr.rel (!%p52_p5) target bundleno = 26 (0x1a), region = 24  ;;  %s110_s21 = sand.u32 (%p52_p5), 1, %s661_s11  }
  0x14   : > { %s491_s22 = sshll.u32 (%p52_p5), %s665_s12, 2  ;;  %s490_s23 = sshll.u32 (%p52_p5), %s110_s21, 4 }
  0x15   : > { %s114_s26 = scalar_lea.vmem (%p52_p5), %s850_s1, %s491_s22  ;;  %s112_s27 = scalar_lea.vmem (%p52_p5), [#allocation2], %s490_s23 }
  0x16   : > { %v130_v0 = vld [vmem:[%s114_s26] sm:$0xf] (%p52_p5)  ;;  %v132_v1 = vld [vmem:[%s114_s26 + $0x8] sm:$0xf] (%p52_p5)  ;;  %v134_v2 = vld [vmem:[%s114_s26 + $0x10] sm:$0xf] (%p52_p5) }
  0x17   : > { %131 = vst [vmem:[%s112_s27] sm:$0xf] (%p52_p5), %v130_v0  ;;  %133 = vst [vmem:[%s112_s27 + $0x4] sm:$0xf] (%p52_p5), %v132_v1  ;;  %v136_v3 = vld [vmem:[%s114_s26 + $0x18] sm:$0xf] (%p52_p5) }
  0x18   : > { %135 = vst [vmem:[%s112_s27 + $0x8] sm:$0xf] (%p52_p5), %v134_v2  ;;  %137 = vst [vmem:[%s112_s27 + $0xc] sm:$0xf] (%p52_p5), %v136_v3 }
  0x1a PF: > { %p492_p10 = scmp.ge.s32.totalorder %s665_s12, 1  ;;  %p167_p11 = scmp.lt.s32.totalorder %s665_s12, 3 }
  0x1c   : > { %p168_p12 = pnand %p492_p10, %p167_p11 }
  0x1d   : > { %s743_s28 = sand.u32 (!%p168_p12), 1, %s657_s10   ;;  %v595_v4 = vld [vmem:[%s849_s0] sm:$0xff] (!%p168_p12)   ;;  %vm268_vm0 = vcmask (!%p168_p12), 261120   ;;  %v597_v8 = vld [vmem:[%s849_s0 + $0x8] sm:$0xff] (!%p168_p12)   ;;  %v599_v10 = vld [vmem:[%s849_s0 + $0x10] sm:$0xff] (!%p168_p12)   ;;  %s667_s14 = smov (!%p168_p12), [#allocation3]  }
  0x1e   : > { %171 = sbr.rel (%p168_p12) target bundleno = 280 (0x118), region = 65  ;;  %s493_s3 = sshll.u32 (!%p168_p12), %s743_s28, 4  ;;  %v596_v5 = vld [vmem:[%s849_s0 + $0x20] sm:$0xff] (!%p168_p12)   ;;  %531 = vmatprep.mubr.msk.bf16.mxu0 (!%p168_p12), %vm268_vm0, %v595_v4  ;;  %v598_v9 = vld [vmem:[%s849_s0 + $0x28] sm:$0xff] (!%p168_p12)   ;;  %v600_v11 = vld [vmem:[%s849_s0 + $0x30] sm:$0xff] (!%p168_p12)  }
  0x1f   : > { %s176_s6 = scalar_lea.vmem (!%p168_p12), [#allocation2], %s493_s3  ;;  %539 = vmatprep.mubr.msk.bf16.mxu1 (!%p168_p12), %vm268_vm0, %v596_v5  ;;  %v601_v12 = vld [vmem:[%s849_s0 + $0x18] sm:$0xff] (!%p168_p12)   ;;  %s494_s29 = sshll.u32 (!%p168_p12), %s743_s28, 7 }
  0x20   : > { %v593_v6 = vld [vmem:[%s176_s6] sm:$0xff] (!%p168_p12)   ;;  %v594_v7 = vld [vmem:[%s176_s6 + $0x8] sm:$0xff] (!%p168_p12)   ;;  %s779_s30 = scalar_lea.vmem (!%p168_p12), [#allocation3], %s494_s29  ;;  %s514_s3 = sshll.u32 (!%p168_p12), %s486_s13, 7 }
  0x21   : > { %527 = vmatprep.subr.bf16.mxu0 (!%p168_p12), %v593_v6  ;;  %547 = vmatprep.subr.bf16.mxu1 (!%p168_p12), %v593_v6  ;;  %v602_v13 = vld [vmem:[%s849_s0 + $0x38] sm:$0xff] (!%p168_p12)   ;;  %s419_s4 = sshll.u32 (!%p168_p12), %s779_s30, 4  ;;  %s795_s7 = scalar_lea.hbm (!%p168_p12), %s851_s2, %s514_s3  ;;  %s799_s4 = int_to_ptr.vmem [resolvable:$true] %s419_s4 }
  0x22   : > { %528 = vmatpush3.bf16.msra.mxu0 (!%p168_p12), %v593_v6  ;;  %549 = vmatpush3.bf16.msra.mxu1 (!%p168_p12), %v593_v6  ;;  %s407_s13 = scalar_lea.sflag (!%p168_p12), [#allocation4], %s743_s28  ;;  %s603_s8 = scalar_lea.vmem (!%p168_p12), %s799_s4, 2048 }
  0x23   : > { %529 = vmatprep.subr.bf16.mxu0 (!%p168_p12), %v594_v7  ;;  %548 = vmatprep.subr.bf16.mxu1 (!%p168_p12), %v594_v7  ;;  %p604_p13 = scmp.ne.s32.totalorder (!%p168_p12), %s799_s4, %s603_s8  ;;  %s607_s16 = sshll.u32 (!%p168_p12), %s667_s14, 4  ;;  %s608_s16 = int_to_ptr.vmem [resolvable:$false] %s607_s16 }
  0x24   : > { %s609_s17 = scalar_lea.vmem (!%p168_p12), %s608_s16, 4096  ;;  %p610_p2 = scmp.lt.s32.totalorder (!%p168_p12), %s799_s4, %s608_s16 }
  0x25   : > { %p605_p0 = pnand %p604_p13, %p724_p6  ;;  %p611_p3 = scmp.lt.s32.totalorder %s609_s17, %s603_s8 }
  0x26   : > { %530 = vmatpush3.bf16.msra.mxu0 %v594_v7  ;;  %550 = vmatpush3.bf16.msra.mxu1 %v594_v7 }
  0x27   : > { %p606_p1 = pneg %p605_p0  ;;  %p612_p4 = por %p611_p3, %p610_p2 }
  0x29   : > { %532 = vmatmul.mubr.msk.bf16.vlgmr.msra.gmra.mrb[0].mxu0 %vm268_vm0, %v597_v8  ;;  %540 = vmatmul.mubr.msk.bf16.vlgmr.msra.gmra.mrb[0].mxu1 %vm268_vm0, %v598_v9  ;;  %p613_p5 = pnand %p612_p4, %p606_p1 }
  0x2a   : > { %535 = vmatprep.mubr.msk.bf16.mxu0 %vm268_vm0, %v599_v10  ;;  %543 = vmatprep.mubr.msk.bf16.mxu1 %vm268_vm0, %v600_v11 }
  0x31   : > { %536 = vmatmul.mubr.msk.bf16.gmra.mrb[4].mxu0 %vm268_vm0, %v601_v12  ;;  %544 = vmatmul.mubr.msk.bf16.gmra.mrb[4].mxu1 %vm268_vm0, %v602_v13 }
  0xfc   : > { %v533_v14 = vpop.f32.mrb[0].mxu0  ;;  %v541_v15 = vpop.f32.mrb[0].mxu1 }
  0xfd   : > { %392 = vst [vmem:[%s779_s30 + $0x10] sm:$0xff] %v533_v14  ;;  %400 = vst [vmem:[%s779_s30 + $0x50] sm:$0xff] %v541_v15  ;;  %v327_v16 = vpop.f32.mrb[1].mxu0  ;;  %v359_v17 = vpop.f32.mrb[1].mxu1 }
  0xfe   : > { %390 = vst [vmem:[%s779_s30] sm:$0xff] %v327_v16  ;;  %398 = vst [vmem:[%s779_s30 + $0x40] sm:$0xff] %v359_v17  ;;  %v534_v18 = vpop.f32.mrb[2].mxu0  ;;  %v542_v19 = vpop.f32.mrb[2].mxu1 }
  0xff   : > { %393 = vst [vmem:[%s779_s30 + $0x18] sm:$0xff] %v534_v18  ;;  %401 = vst [vmem:[%s779_s30 + $0x58] sm:$0xff] %v542_v19  ;;  %v330_v20 = vpop.f32.mrb[3].mxu0  ;;  %v362_v21 = vpop.f32.mrb[3].mxu1 }
 0x100   : > { %391 = vst [vmem:[%s779_s30 + $0x8] sm:$0xff] %v330_v20  ;;  %399 = vst [vmem:[%s779_s30 + $0x48] sm:$0xff] %v362_v21 }
 0x104   : > { %v537_v22 = vpop.f32.mrb[4].mxu0  ;;  %v545_v23 = vpop.f32.mrb[4].mxu1 }
 0x105   : > { %396 = vst [vmem:[%s779_s30 + $0x30] sm:$0xff] %v537_v22  ;;  %404 = vst [vmem:[%s779_s30 + $0x70] sm:$0xff] %v545_v23  ;;  %v343_v24 = vpop.f32.mrb[5].mxu0  ;;  %v375_v25 = vpop.f32.mrb[5].mxu1 }
 0x106   : > { %394 = vst [vmem:[%s779_s30 + $0x20] sm:$0xff] %v343_v24  ;;  %402 = vst [vmem:[%s779_s30 + $0x60] sm:$0xff] %v375_v25  ;;  %v538_v26 = vpop.f32.mrb[6].mxu0  ;;  %v546_v27 = vpop.f32.mrb[6].mxu1 }
 0x107   : > { %397 = vst [vmem:[%s779_s30 + $0x38] sm:$0xff] %v538_v26  ;;  %405 = vst [vmem:[%s779_s30 + $0x78] sm:$0xff] %v546_v27  ;;  %v346_v28 = vpop.f32.mrb[7].mxu0  ;;  %v378_v29 = vpop.f32.mrb[7].mxu1 }
 0x108   : > { %395 = vst [vmem:[%s779_s30 + $0x28] sm:$0xff] %v346_v28  ;;  %403 = vst [vmem:[%s779_s30 + $0x68] sm:$0xff] %v378_v29 }
 0x109   : > { %616 = shalt.err (!%p613_p5)
}
 0x10a   : > { %s617_s21 = scalar_lea.hbm %s795_s7, 2048  ;;  %s621_s24 = scalar_lea.hbm %s851_s2, 4096 }
 0x10b   : > { %p618_p7 = scmp.ne.s32.totalorder %s795_s7, %s617_s21  ;;  %p622_p12 = scmp.lt.u32.totalorder %s795_s7, %s851_s2 }
 0x10c   : > { %p623_p13 = scmp.lt.u32.totalorder %s621_s24, %s617_s21  ;;  %p625_p1 = scmp.lt.u32.totalorder %s617_s21, %s795_s7 }
 0x10d   : > { %p619_p10 = pnand %p618_p7, %p724_p6 }
 0x10e   : > { %p624_p0 = por %p623_p13, %p622_p12 }
 0x10f   : > { %p620_p11 = pneg %p619_p10 }
 0x110   : > { %p626_p2 = por %p625_p1, %p624_p0 }
 0x112   : > { %p627_p3 = pnand %p626_p2, %p620_p11 }
 0x114   : > { %630 = shalt.err (!%p627_p3)
}
 0x115   : > { %s668_s27 = smov 128   ;;  %s669_s29 = smov 256  }
 0x116   : > { %s670_s30 = smov 8  }
 0x117   : > { %551 = dma.vmem_to_hbm [thread:$0]  (%p724_p6), %s799_s4, 2048, %s795_s7, %s407_s13, %s668_s27, %s669_s29, %s670_s30  }
 0x118 PF: > { %s434_s3 = sand.u32 1, %s653_s9   ;;  %p554_p4 = pnand %p489_p9, %p728_p8 }
 0x119   : > { %s435_s5 = scalar_lea.sflag [#allocation4], %s434_s3 }
 0x11a   : > { %648 = dma.done.wait (!%p554_p4), %s435_s5, 2048  }
 0x11b   : > { %650 = vsyncadd (!%p554_p4), %s435_s5, 4294965248  ;;  %p12_p5 = scmp.ge.s32.totalorder %s709_s15, 4   ;;  %s854_s9 = smov %s657_s10 }
 0x11c   : > { %s855_s10 = smov %s661_s11  ;;  %s856_s11 = smov %s722_s18 }
 0x11d   : > { %s857_s12 = smov %s709_s15  ;;  %14 = sbr.rel (!%p12_p5) target bundleno = 3 (0x3), region = 109 }
 0x124   :  { %440 = vsyncpa [#allocation4], 1 }
 0x125   :  { %442 = vsyncpa [#allocation4 + $0x1], 1 }

</bundles_post_ra>
